<compile_context>
chip_gen: v6e
topology: v6e:2x2x1
jax: 0.10.0
libtpu: 0.0.40
codegen_flags: <defaults>
</compile_context>

<pallas_src>
import functools

import jax
import jax.numpy as jnp
from jax.experimental import pallas as pl
from jax.experimental.pallas import tpu as pltpu


def _rnd_kernel(x_ref, w1b1_ref, w2b2_ref, keep_ref, loss_ref, *,
                d_in, hidden, d_out):
    x = x_ref[...]                                      # (B, d_in) f32

    # ---- fused layer-1 (target | predictor): one (d_in, 2H) GEMM ----
    w1 = w1b1_ref[:d_in, :]                             # (d_in, 2H)
    b1 = w1b1_ref[d_in:d_in + 1, :]                     # (1, 2H)
    h_all = jnp.dot(x, w1, preferred_element_type=jnp.float32) + b1
    h_all = jnp.maximum(h_all, 0.0)                     # ReLU (both branches)
    ht = h_all[:, :hidden]                              # target branch (B, H)
    hp = h_all[:, hidden:]                              # predictor branch (B, H)

    # ---- dropout #1 (p=0.5); x2 scale already folded into wp2 ----
    keep = keep_ref[...]                                # (B, 2H) in {0, 1}
    hp = hp * keep[:, :hidden]

    # ---- unpack layer-2/3 weights: columns [wt2 | 2*wp2 | 2*wp3], last row = biases ----
    w2b2 = w2b2_ref[...]                                # (H+1, d_out + H + d_out)
    w_rows = w2b2[:hidden, :]
    b_row = w2b2[hidden:hidden + 1, :]
    wt2 = w_rows[:, :d_out]
    wp2 = w_rows[:, d_out:d_out + hidden]
    wp3 = w_rows[:, d_out + hidden:]
    bt2 = b_row[:, :d_out]
    bp2 = b_row[:, d_out:d_out + hidden]
    bp3 = b_row[:, d_out + hidden:]

    # ---- target head (frozen net, layer 2) ----
    target = jnp.dot(ht, wt2, preferred_element_type=jnp.float32) + bt2

    # ---- predictor layers 2 & 3 (dropout #2 between them) ----
    h2 = jnp.dot(hp, wp2, preferred_element_type=jnp.float32) + bp2
    h2 = jnp.maximum(h2, 0.0)
    h2 = h2 * keep[:, hidden:]
    predict = jnp.dot(h2, wp3, preferred_element_type=jnp.float32) + bp3

    # ---- MSE loss, mean reduction over all elements ----
    diff = predict - target
    loss_ref[0, 0] = jnp.mean(diff * diff)


def pack_params(params):
    """Host-side packing of the 10 Linear params into two VMEM buffers.

    w1b1: (d_in + 1, 2H)          rows 0:d_in = [wt1 | wp1], last row = [bt1 | bp1]
    w2b2: (H + 1, d_out+H+d_out)  rows 0:H    = [wt2 | 2*wp2 | 2*wp3],
                                  last row    = [bt2 | bp2 | bp3]
    (the factor 2 is the inverted-dropout 1/(1-p) scale folded into the weights)
    """
    w1 = jnp.concatenate([params["wt1"], params["wp1"]], axis=1)
    b1 = jnp.concatenate([params["bt1"], params["bp1"]], axis=1)
    w1b1 = jnp.concatenate([w1, b1], axis=0)

    w2 = jnp.concatenate(
        [params["wt2"], 2.0 * params["wp2"], 2.0 * params["wp3"]], axis=1)
    b2 = jnp.concatenate([params["bt2"], params["bp2"], params["bp3"]], axis=1)
    w2b2 = jnp.concatenate([w2, b2], axis=0)
    return w1b1, w2b2


def rnd_forward(x, w1b1, w2b2, keep_mask, *, d_in, hidden, d_out):
    """Scalar RND loss (MSE between predictor and frozen target outputs)."""
    kernel = functools.partial(_rnd_kernel, d_in=d_in, hidden=hidden, d_out=d_out)
    out = pl.pallas_call(
        kernel,
        out_shape=jax.ShapeDtypeStruct((1, 1), jnp.float32),
        in_specs=[pl.BlockSpec(memory_space=pltpu.MemorySpace.VMEM)] * 4,
        out_specs=pl.BlockSpec(memory_space=pltpu.MemorySpace.SMEM),
    )(x, w1b1, w2b2, keep_mask)
    return out[0, 0]


def init_params(key, input_dim, hidden_dim, output_dim):
    """PyTorch-Linear-like uniform fan-in init; weights stored as (in_dim, out_dim)."""
    ks = jax.random.split(key, 10)

    def lin(kw, kb, fan_in, fan_out):
        bound = 1.0 / jnp.sqrt(fan_in)
        w = jax.random.uniform(kw, (fan_in, fan_out), jnp.float32, -bound, bound)
        b = jax.random.uniform(kb, (1, fan_out), jnp.float32, -bound, bound)
        return w, b

    wt1, bt1 = lin(ks[0], ks[1], input_dim, hidden_dim)
    wt2, bt2 = lin(ks[2], ks[3], hidden_dim, output_dim)
    wp1, bp1 = lin(ks[4], ks[5], input_dim, hidden_dim)
    wp2, bp2 = lin(ks[6], ks[7], hidden_dim, hidden_dim)
    wp3, bp3 = lin(ks[8], ks[9], hidden_dim, output_dim)
    return dict(
        wt1=wt1, bt1=bt1, wt2=wt2, bt2=bt2,
        wp1=wp1, bp1=bp1, wp2=wp2, bp2=bp2, wp3=wp3, bp3=bp3,
    )


def rnd_reference(x, params, keep_mask, hidden):
    """Pure-JAX reference (same math/masks as the kernel) for a sanity check."""
    ht = jnp.maximum(x @ params["wt1"] + params["bt1"], 0.0)
    target = ht @ params["wt2"] + params["bt2"]
    h1 = jnp.maximum(x @ params["wp1"] + params["bp1"], 0.0)
    h1 = h1 * keep_mask[:, :hidden] * 2.0
    h2 = jnp.maximum(h1 @ params["wp2"] + params["bp2"], 0.0)
    h2 = h2 * keep_mask[:, hidden:] * 2.0
    predict = h2 @ params["wp3"] + params["bp3"]
    return jnp.mean((predict - target) ** 2)


if __name__ == "__main__":
    B, INPUT_DIM, HIDDEN_DIM, OUTPUT_DIM = 8, 32, 64, 16

    key = jax.random.PRNGKey(0)
    kx, kp, kd = jax.random.split(key, 3)
    x = jax.random.normal(kx, (B, INPUT_DIM), dtype=jnp.float32)
    params = init_params(kp, INPUT_DIM, HIDDEN_DIM, OUTPUT_DIM)

    # TODO(synk): dropout keep-masks are drawn host-side with jax.random (not the
    # in-kernel TPU hardware PRNG), so they are deterministic per key but not
    # bit-identical to torch's RNG stream.
    keep_mask = jax.random.bernoulli(
        kd, 0.5, (B, 2 * HIDDEN_DIM)).astype(jnp.float32)

    w1b1, w2b2 = pack_params(params)
    loss = rnd_forward(x, w1b1, w2b2, keep_mask,
                       d_in=INPUT_DIM, hidden=HIDDEN_DIM, d_out=OUTPUT_DIM)
    loss = jax.block_until_ready(loss)

    ref = rnd_reference(x, params, keep_mask, HIDDEN_DIM)
    assert jnp.isfinite(loss), "RND loss is not finite"
    assert jnp.allclose(loss, ref, rtol=5e-2, atol=1e-3), (loss, ref)
    print("KERNEL_OK")
</pallas_src>

<mosaic_0001>
module attributes {stable_mosaic.version = 11 : i64} {
  func.func @_rnd_kernel(%arg0: memref<8x32xf32, #tpu.memory_space<vmem>>, %arg1: memref<33x128xf32, #tpu.memory_space<vmem>>, %arg2: memref<65x96xf32, #tpu.memory_space<vmem>>, %arg3: memref<8x128xf32, #tpu.memory_space<vmem>>, %arg4: memref<1x1xf32, #tpu.memory_space<smem>>) attributes {dimension_semantics = [], scalar_prefetch = 0 : i64, scratch_operands = 0 : i64, tpu.core_type = #tpu.core_type<tc>} {
    %c0 = arith.constant 0 : index
    %c0_0 = arith.constant 0 : index
    %0 = vector.load %arg0[%c0, %c0_0] : memref<8x32xf32, #tpu.memory_space<vmem>>, vector<8x32xf32>
    %c0_1 = arith.constant 0 : index
    %c0_2 = arith.constant 0 : index
    %1 = vector.load %arg1[%c0_1, %c0_2] : memref<33x128xf32, #tpu.memory_space<vmem>>, vector<32x128xf32>
    %c32 = arith.constant 32 : index
    %c0_3 = arith.constant 0 : index
    %2 = vector.load %arg1[%c32, %c0_3] : memref<33x128xf32, #tpu.memory_space<vmem>>, vector<1x128xf32>
    %cst = arith.constant dense<0.000000e+00> : vector<8x128xf32>
    %3 = tpu.matmul %0, %1, %cst {dimension_numbers = #tpu.dot_dimension_numbers<[1], [0], [0], [1], [0, 0, 1, 1], [], []>} : vector<8x32xf32>, vector<32x128xf32>, vector<8x128xf32> -> vector<8x128xf32>
    %4 = vector.broadcast %2 : vector<1x128xf32> to vector<8x128xf32>
    %5 = arith.addf %3, %4 : vector<8x128xf32>
    %cst_4 = arith.constant 0.000000e+00 : f32
    %6 = vector.broadcast %cst_4 : f32 to vector<8x128xf32>
    %7 = arith.maximumf %5, %6 : vector<8x128xf32>
    %8 = vector.extract_strided_slice %7 {offsets = [0, 0], sizes = [8, 64], strides = [1, 1]} : vector<8x128xf32> to vector<8x64xf32>
    %9 = vector.extract_strided_slice %7 {offsets = [0, 64], sizes = [8, 64], strides = [1, 1]} : vector<8x128xf32> to vector<8x64xf32>
    %c0_5 = arith.constant 0 : index
    %c0_6 = arith.constant 0 : index
    %10 = vector.load %arg3[%c0_5, %c0_6] : memref<8x128xf32, #tpu.memory_space<vmem>>, vector<8x128xf32>
    %11 = vector.extract_strided_slice %10 {offsets = [0, 0], sizes = [8, 64], strides = [1, 1]} : vector<8x128xf32> to vector<8x64xf32>
    %12 = arith.mulf %9, %11 : vector<8x64xf32>
    %c0_7 = arith.constant 0 : index
    %c0_8 = arith.constant 0 : index
    %13 = vector.load %arg2[%c0_7, %c0_8] : memref<65x96xf32, #tpu.memory_space<vmem>>, vector<65x96xf32>
    %14 = vector.extract_strided_slice %13 {offsets = [0, 0], sizes = [64, 96], strides = [1, 1]} : vector<65x96xf32> to vector<64x96xf32>
    %15 = vector.extract_strided_slice %13 {offsets = [64, 0], sizes = [1, 96], strides = [1, 1]} : vector<65x96xf32> to vector<1x96xf32>
    %16 = vector.extract_strided_slice %14 {offsets = [0, 0], sizes = [64, 16], strides = [1, 1]} : vector<64x96xf32> to vector<64x16xf32>
    %17 = vector.extract_strided_slice %14 {offsets = [0, 16], sizes = [64, 64], strides = [1, 1]} : vector<64x96xf32> to vector<64x64xf32>
    %18 = vector.extract_strided_slice %14 {offsets = [0, 80], sizes = [64, 16], strides = [1, 1]} : vector<64x96xf32> to vector<64x16xf32>
    %19 = vector.extract_strided_slice %15 {offsets = [0, 0], sizes = [1, 16], strides = [1, 1]} : vector<1x96xf32> to vector<1x16xf32>
    %20 = vector.extract_strided_slice %15 {offsets = [0, 16], sizes = [1, 64], strides = [1, 1]} : vector<1x96xf32> to vector<1x64xf32>
    %21 = vector.extract_strided_slice %15 {offsets = [0, 80], sizes = [1, 16], strides = [1, 1]} : vector<1x96xf32> to vector<1x16xf32>
    %cst_9 = arith.constant dense<0.000000e+00> : vector<8x16xf32>
    %22 = tpu.matmul %8, %16, %cst_9 {dimension_numbers = #tpu.dot_dimension_numbers<[1], [0], [0], [1], [0, 0, 1, 1], [], []>} : vector<8x64xf32>, vector<64x16xf32>, vector<8x16xf32> -> vector<8x16xf32>
    %23 = vector.broadcast %19 : vector<1x16xf32> to vector<8x16xf32>
    %24 = arith.addf %22, %23 : vector<8x16xf32>
    %cst_10 = arith.constant dense<0.000000e+00> : vector<8x64xf32>
    %25 = tpu.matmul %12, %17, %cst_10 {dimension_numbers = #tpu.dot_dimension_numbers<[1], [0], [0], [1], [0, 0, 1, 1], [], []>} : vector<8x64xf32>, vector<64x64xf32>, vector<8x64xf32> -> vector<8x64xf32>
    %26 = vector.broadcast %20 : vector<1x64xf32> to vector<8x64xf32>
    %27 = arith.addf %25, %26 : vector<8x64xf32>
    %cst_11 = arith.constant 0.000000e+00 : f32
    %28 = vector.broadcast %cst_11 : f32 to vector<8x64xf32>
    %29 = arith.maximumf %27, %28 : vector<8x64xf32>
    %30 = vector.extract_strided_slice %10 {offsets = [0, 64], sizes = [8, 64], strides = [1, 1]} : vector<8x128xf32> to vector<8x64xf32>
    %31 = arith.mulf %29, %30 : vector<8x64xf32>
    %cst_12 = arith.constant dense<0.000000e+00> : vector<8x16xf32>
    %32 = tpu.matmul %31, %18, %cst_12 {dimension_numbers = #tpu.dot_dimension_numbers<[1], [0], [0], [1], [0, 0, 1, 1], [], []>} : vector<8x64xf32>, vector<64x16xf32>, vector<8x16xf32> -> vector<8x16xf32>
    %33 = vector.broadcast %21 : vector<1x16xf32> to vector<8x16xf32>
    %34 = arith.addf %32, %33 : vector<8x16xf32>
    %35 = arith.subf %34, %24 : vector<8x16xf32>
    %36 = arith.mulf %35, %35 : vector<8x16xf32>
    %37 = vector.shape_cast %36 : vector<8x16xf32> to vector<1x8x16xf32>
    %cst_13 = arith.constant dense<0.000000e+00> : vector<1xf32>
    %38 = vector.multi_reduction <add>, %37, %cst_13 [1, 2] : vector<1x8x16xf32> to vector<1xf32>
    %39 = vector.shape_cast %38 : vector<1xf32> to vector<1x1x1xf32>
    %40 = vector.extract %39[0, 0, 0] : f32 from vector<1x1x1xf32>
    %cst_14 = arith.constant 1.280000e+02 : f32
    %41 = arith.divf %40, %cst_14 : f32
    %c0_15 = arith.constant 0 : index
    %c0_16 = arith.constant 0 : index
    %42 = memref.load %arg4[%c0_15, %c0_16] : memref<1x1xf32, #tpu.memory_space<smem>>
    memref.store %41, %arg4[%c0_15, %c0_16] : memref<1x1xf32, #tpu.memory_space<smem>>
    return
  }
}

</mosaic_0001>

<bundles_post_ra>
// kernel: tpu_custom_call.1
= control target key start
LH: loop header
LB: loop body
LE: loop exit
PB: predicated region body
PF: predicated region fallthrough
CT: control target
= control target key end

     0   :  { %9 = vsyncpa [#allocation3], 0  ;;  %s831_s0 = inlined_call_operand.hbm [shape: f32[8,32], index: 0, kind: input, shape index: {}]   ;;  %s832_s1 = inlined_call_operand.hbm [shape: f32[33,128], index: 1, kind: input, shape index: {}]   ;;  %s833_s2 = inlined_call_operand.hbm [shape: f32[65,96], index: 2, kind: input, shape index: {}]   ;;  %s834_s3 = inlined_call_operand.hbm [shape: f32[8,128], index: 3, kind: input, shape index: {}]   ;;  %s835_s4 = inlined_call_operand.hbm [shape: f32[1,1], index: 4, kind: output, shape index: {}]  }
   0x1   :  { %10 = vsyncpa [#allocation6], 0 }
   0x2   :  { %11 = vsyncpa [#allocation9], 0 }
   0x3   :  { %12 = vsyncpa [#allocation4], 0  ;;  %s710_s15 = smov [#allocation5]  }
   0x4   :  { %s28_s16 = sshll.u32 %s710_s15, 4  ;;  %s29_s16 = int_to_ptr.vmem [resolvable:$true] %s28_s16 }
   0x5   :  { %s622_s17 = scalar_lea.vmem %s29_s16, 640  ;;  %p627_p1 = scmp.lt.s32.totalorder %s29_s16, %s29_s16 }
   0x6   :  { %p623_p0 = scmp.ne.s32.totalorder %s29_s16, %s622_s17  ;;  %p628_p2 = scmp.lt.s32.totalorder %s622_s17, %s622_s17 }
   0x8   :  { %p629_p3 = por %p628_p2, %p627_p1 }
   0xa   :  { %p630_p4 = pnand %p629_p3, %p623_p0 }
   0xc   :  { %633 = shalt.err (!%p630_p4)
}
   0xd   :  { %s711_s18 = smov 128   ;;  %s712_s19 = smov 8  }
   0xe   :  { %34 = dma.hbm_to_vmem [thread:$0]  %s832_s1, 640, %s29_s16, [#allocation6], %s711_s18, %s711_s18, %s712_s19  }
   0xf   :  { %s713_s22 = smov [#allocation2]   ;;  %s714_s24 = smov [#allocation7]  }
  0x10   :  { %s19_s23 = sshll.u32 %s713_s22, 4  ;;  %s40_s25 = sshll.u32 %s714_s24, 4  ;;  %s20_s23 = int_to_ptr.vmem [resolvable:$true] %s19_s23  ;;  %s41_s25 = int_to_ptr.vmem [resolvable:$true] %s40_s25 }
  0x11   :  { %s642_s26 = scalar_lea.vmem %s20_s23, 128  ;;  %p647_p6 = scmp.lt.s32.totalorder %s20_s23, %s20_s23 }
  0x12   :  { %p643_p5 = scmp.ne.s32.totalorder %s20_s23, %s642_s26  ;;  %p648_p7 = scmp.lt.s32.totalorder %s642_s26, %s642_s26 }
  0x14   :  { %p649_p8 = por %p648_p7, %p647_p6 }
  0x16   :  { %p650_p9 = pnand %p649_p8, %p643_p5 }
  0x18   :  { %653 = shalt.err (!%p650_p9)
}
  0x19   :  { %22 = dma.hbm_to_vmem [thread:$0]  %s831_s0, 128, %s20_s23, [#allocation3]  }
  0x1a   :  { %s662_s29 = scalar_lea.vmem %s41_s25, 1152  ;;  %p667_p11 = scmp.lt.s32.totalorder %s41_s25, %s41_s25 }
  0x1b   :  { %p663_p10 = scmp.ne.s32.totalorder %s41_s25, %s662_s29  ;;  %p668_p12 = scmp.lt.s32.totalorder %s662_s29, %s662_s29 }
  0x1d   :  { %p669_p13 = por %p668_p12, %p667_p11 }
  0x1f   :  { %p670_p0 = pnand %p669_p13, %p663_p10 }
  0x21   :  { %673 = shalt.err (!%p670_p0)
}
  0x22   :  { %46 = dma.hbm_to_vmem [thread:$0]  %s833_s2, 1152, %s41_s25, [#allocation6], %s711_s18, %s711_s18, %s712_s19  }
  0x23   :  { %s715_s5 = smov [#allocation8]  }
  0x24   :  { %s53_s6 = sshll.u32 %s715_s5, 4  ;;  %s54_s6 = int_to_ptr.vmem [resolvable:$true] %s53_s6 }
  0x25   :  { %s682_s7 = scalar_lea.vmem %s54_s6, 128  ;;  %p687_p2 = scmp.lt.s32.totalorder %s54_s6, %s54_s6 }
  0x26   :  { %p683_p1 = scmp.ne.s32.totalorder %s54_s6, %s682_s7  ;;  %p688_p3 = scmp.lt.s32.totalorder %s682_s7, %s682_s7 }
  0x28   :  { %p689_p4 = por %p688_p3, %p687_p2 }
  0x2a   :  { %p690_p5 = pnand %p689_p4, %p683_p1 }
  0x2c   :  { %693 = shalt.err (!%p690_p5)
}
  0x2d   :  { %56 = dma.hbm_to_vmem [thread:$0]  %s834_s3, 128, %s54_s6, [#allocation9]  }
  0x2e   :  { %702 = dma.done.wait [#allocation3], 128  }
  0x2f   :  { %703 = vsyncadd [#allocation3], 4294967168 }
  0x30   :  { %704 = dma.done.wait [#allocation6], 1792  }
  0x31   :  { %705 = vsyncadd [#allocation6], 4294965504 }
  0x32   :  { %706 = dma.done.wait [#allocation9], 128  }
  0x33   :  { %707 = vsyncadd [#allocation9], 4294967168  ;;  %v716_v0 = vmov 0.0   ;;  %vm717_vm0 = vmmov 0   ;;  %v73_v1 = vld [vmem:[#allocation5 + $0x18] sm:$0xff]  ;;  %v72_v2 = vld [vmem:[#allocation5 + $0x10] sm:$0xff] }
  0x34   :  { %532 = vmatprep.subr.mxu0 %v716_v0  ;;  %540 = vmatprep.mubr.msk.f32.mxu0 %vm717_vm0, %v716_v0  ;;  %v154_v3 = vld [vmem:[#allocation8] sm:$0xff]  ;;  %v71_v4 = vld [vmem:[#allocation5 + $0x8] sm:$0xff]  ;;  %s718_s2 = smov 64   ;;  %v767_v5 = vld [vmem:[#allocation7 + $0x38] sm:$0xff]  ;;  %vm79_vm1 = vcmask 261120   ;;  %s719_s3 = smov 112  }
  0x35   :  { %543 = vmatprep.subr.mxu1 %v716_v0  ;;  %559 = vmatprep.mubr.msk.f32.mxu1 %vm717_vm0, %v716_v0  ;;  %v769_v6 = vld [vmem:[#allocation7 + $0x30] sm:$0xff]  ;;  %v70_v7 = vld [vmem:[#allocation5] sm:$0xff]  ;;  %v165_v9 = vld [vmem:[#allocation7 + $0x28] sm:$0xff]  ;;  %s720_s9 = smov 48   ;;  %vm173_vm2 = vcmask 523264   ;;  %vm462_vm3 = vcmask 130048  }
  0x36   :  { %533 = vmatpush3.msra.mxu0 %v73_v1  ;;  %156 = vrot.lane.b32.xlu0 %v154_v3, %s718_s2  ;;  %v69_v8 = vld [vmem:[#allocation2] sm:$0xff]  ;;  %v780_v10 = vld [vmem:[#allocation7 + $0x20] sm:$0xff]  ;;  %v163_v11 = vld [vmem:[#allocation7 + $0x18] sm:$0xff]  ;;  %s721_s12 = smov [#allocation10]  }
  0x37   :  { %534 = vmatprep.subr.mxu0 %v716_v0  ;;  %544 = vmatpush3.msra.mxu1 %v767_v5  ;;  %v162_v12 = vld [vmem:[#allocation7 + $0x10] sm:$0xff]  ;;  %v161_v13 = vld [vmem:[#allocation7 + $0x8] sm:$0xff]  ;;  %v160_v14 = vld [vmem:[#allocation7] sm:$0xff] }
  0x38   :  { %535 = vmatpush3.msra.mxu0 %v72_v2  ;;  %545 = vmatprep.subr.mxu1 %v716_v0  ;;  %v494_v24 = vld [vmem:[#allocation5 + $0x20] ss:$0 sm:$0xff]  ;;  %v496_v30 = vld [vmem:[#allocation7 + $0x40] ss:$0 sm:$0xff] }
  0x39   :  { %536 = vmatprep.subr.mxu0 %v716_v0  ;;  %270 = vrot.lane.b32.xlu1 %v769_v6, %s719_s3 }
  0x3a   :  { %537 = vmatpush3.msra.mxu0 %v71_v4  ;;  %272 = vrot.lane.b32.xlu0 %v767_v5, %s719_s3 }
  0x3b   :  { %538 = vmatprep.subr.mxu0 %v716_v0  ;;  %546 = vmatpush3.msra.mxu1 %v769_v6 }
  0x3c   :  { %539 = vmatpush3.msra.mxu0 %v70_v7  ;;  %547 = vmatprep.subr.mxu1 %v716_v0 }
  0x3d   :  { %541 = vmatmul.mubr.msk.f32.vlgmr.msra.gmra.mxu0 %vm79_vm1, %v69_v8  ;;  %548 = vmatpush3.msra.mxu1 %v165_v9 }
  0x3e   :  { %268 = vrot.lane.b32.xlu1 %v165_v9, %s719_s3  ;;  %549 = vmatprep.subr.mxu1 %v716_v0 }
  0x3f   :  { %266 = vrot.lane.b32.xlu0 %v780_v10, %s719_s3  ;;  %550 = vmatpush3.msra.mxu1 %v780_v10 }
  0x40   :  { %562 = vmatprep.subr.mxu0 %v716_v0  ;;  %551 = vmatprep.subr.mxu1 %v716_v0 }
  0x41   :  { %578 = vmatprep.mubr.msk.f32.mxu0 %vm717_vm0, %v716_v0  ;;  %552 = vmatpush3.msra.mxu1 %v163_v11 }
  0x42   :  { %264 = vrot.lane.b32.xlu1 %v163_v11, %s719_s3  ;;  %553 = vmatprep.subr.mxu1 %v716_v0 }
  0x43   :  { %554 = vmatpush3.msra.mxu1 %v162_v12  ;;  %262 = vrot.lane.b32.xlu0 %v162_v12, %s719_s3 }
  0x44   :  { %555 = vmatprep.subr.mxu1 %v716_v0 }
  0x45   :  { %556 = vmatpush3.msra.mxu1 %v161_v13 }
  0x46   :  { %260 = vrot.lane.b32.xlu1 %v161_v13, %s719_s3  ;;  %557 = vmatprep.subr.mxu1 %v716_v0 }
  0x47   :  { %558 = vmatpush3.msra.mxu1 %v160_v14  ;;  %258 = vrot.lane.b32.xlu0 %v160_v14, %s719_s3 }
  0x48   :  { %581 = vmatprep.subr.mxu1 %v716_v0 }
  0x4b   :  { %374 = vrot.lane.b32.xlu0 %v767_v5, %s720_s9 }
  0x4f   :  { %370 = vrot.lane.b32.xlu0 %v165_v9, %s720_s9 }
  0x53   :  { %366 = vrot.lane.b32.xlu0 %v163_v11, %s720_s9 }
  0x57   :  { %364 = vrot.lane.b32.xlu0 %v162_v12, %s720_s9 }
  0x5b   :  { %360 = vrot.lane.b32.xlu0 %v160_v14, %s720_s9 }
  0xa8   :  { %v800_v15 = vpop.permute.xlu0 %156 }
  0xab   :  { %v271_v16 = vpop.permute.xlu1 %270 }
  0xac   :  { %v273_v17 = vpop.permute.xlu0 %272 }
  0xad   :  { %563 = vmatpush3.msra.mxu0 %v273_v17 }
  0xae   :  { %564 = vmatprep.subr.mxu0 %v716_v0 }
  0xaf   :  { %565 = vmatpush3.msra.mxu0 %v271_v16 }
  0xb0   :  { %v269_v18 = vpop.permute.xlu1 %268  ;;  %566 = vmatprep.subr.mxu0 %v716_v0 }
  0xb1   :  { %v267_v19 = vpop.permute.xlu0 %266  ;;  %567 = vmatpush3.msra.mxu0 %v269_v18 }
  0xb2   :  { %568 = vmatprep.subr.mxu0 %v716_v0 }
  0xb3   :  { %569 = vmatpush3.msra.mxu0 %v267_v19 }
  0xb4   :  { %v265_v20 = vpop.permute.xlu1 %264  ;;  %570 = vmatprep.subr.mxu0 %v716_v0 }
  0xb5   :  { %571 = vmatpush3.msra.mxu0 %v265_v20  ;;  %v263_v21 = vpop.permute.xlu0 %262 }
  0xb6   :  { %572 = vmatprep.subr.mxu0 %v716_v0 }
  0xb7   :  { %573 = vmatpush3.msra.mxu0 %v263_v21 }
  0xb8   :  { %v261_v22 = vpop.permute.xlu1 %260  ;;  %574 = vmatprep.subr.mxu0 %v716_v0 }
  0xb9   :  { %575 = vmatpush3.msra.mxu0 %v261_v22  ;;  %v259_v23 = vpop.permute.xlu0 %258 }
  0xba   :  { %576 = vmatprep.subr.mxu0 %v716_v0 }
  0xbb   :  { %577 = vmatpush3.msra.mxu0 %v259_v23 }
  0xbd   :  { %v375_v31 = vpop.permute.xlu0 %374 }
  0xc1   :  { %v371_v33 = vpop.permute.xlu0 %370 }
  0xc5   :  { %v367_v36 = vpop.permute.xlu0 %366 }
  0xc9   :  { %v365_v38 = vpop.permute.xlu0 %364 }
  0xcd   :  { %v361_v40 = vpop.permute.xlu0 %360 }
  0xfd   :  { %v149_v25 = vpop.f32.mrf.mxu0 }
  0xfe   :  { %v150_v26 = vadd.f32 %v494_v24, %v149_v25 }
  0xff   :  { %v542_v27 = vpop.f32.mrf.mxu0 }
 0x100   :  { %v153_v28 = vmax.f32 %v150_v26, 0.0 }
 0x102   :  { %v159_v29 = vmul.f32 %v800_v15, %v153_v28  ;;  %560 = vmatmul.mubr.msk.f32.vlgmr.msra.gmra.mxu1 %vm173_vm2, %v153_v28 }
 0x103   :  { %597 = vmatprep.mubr.msk.f32.mxu1 %vm717_vm0, %v716_v0  ;;  %582 = vmatpush3.msra.mxu1 %v375_v31 }
 0x104   :  { %248 = vrot.lane.b32.xlu1 %v159_v29, %s718_s2  ;;  %583 = vmatprep.subr.mxu1 %v716_v0 }
 0x108   :  { %372 = vrot.lane.b32.xlu1 %v769_v6, %s720_s9 }
 0x10c   :  { %368 = vrot.lane.b32.xlu1 %v780_v10, %s720_s9 }
 0x110   :  { %283 = vrot.lane.b32.xlu1 %v496_v30, %s719_s3 }
 0x114   :  { %362 = vrot.lane.b32.xlu1 %v161_v13, %s720_s9 }
 0x118   :  { %384 = vrot.lane.b32.xlu1 %v496_v30, %s720_s9 }
 0x176   :  { %v249_v32 = vpop.permute.xlu1 %248 }
 0x177   :  { %579 = vmatmul.mubr.msk.f32.vlgmr.msra.gmra.mxu0 %vm173_vm2, %v249_v32 }
 0x17a   :  { %v373_v34 = vpop.permute.xlu1 %372 }
 0x17b   :  { %584 = vmatpush3.msra.mxu1 %v373_v34 }
 0x17c   :  { %585 = vmatprep.subr.mxu1 %v716_v0 }
 0x17d   :  { %586 = vmatpush3.msra.mxu1 %v371_v33 }
 0x17e   :  { %587 = vmatprep.subr.mxu1 %v716_v0  ;;  %v369_v35 = vpop.permute.xlu1 %368 }
 0x17f   :  { %588 = vmatpush3.msra.mxu1 %v369_v35 }
 0x180   :  { %589 = vmatprep.subr.mxu1 %v716_v0 }
 0x181   :  { %590 = vmatpush3.msra.mxu1 %v367_v36 }
 0x182   :  { %591 = vmatprep.subr.mxu1 %v716_v0  ;;  %v284_v37 = vpop.permute.xlu1 %283 }
 0x183   :  { %592 = vmatpush3.msra.mxu1 %v365_v38 }
 0x184   :  { %593 = vmatprep.subr.mxu1 %v716_v0 }
 0x186   :  { %v363_v39 = vpop.permute.xlu1 %362 }
 0x187   :  { %594 = vmatpush3.msra.mxu1 %v363_v39 }
 0x188   :  { %595 = vmatprep.subr.mxu1 %v716_v0 }
 0x189   :  { %596 = vmatpush3.msra.mxu1 %v361_v40 }
 0x18a   :  { %v385_v48 = vpop.permute.xlu1 %384 }
 0x1c2   :  { %v243_v41 = vpop.f32.mrf.mxu1 }
 0x1c3   :  { %v244_v50 = vadd.f32 %v496_v30, %v243_v41 }
 0x1c4   :  { %v561_v42 = vpop.f32.mrf.mxu1 }
 0x237   :  { %v354_v43 = vpop.f32.mrf.mxu0 }
 0x238   :  { %v355_v44 = vadd.f32 %v354_v43, %v284_v37 }
 0x239   :  { %v580_v45 = vpop.f32.mrf.mxu0 }
 0x23a   :  { %v358_v46 = vmax.f32 %v355_v44, 0.0 }
 0x23c   :  { %v359_v47 = vmul.f32 %v358_v46, %v800_v15 }
 0x23e   :  { %598 = vmatmul.mubr.msk.f32.vlgmr.msra.gmra.mxu1 %vm173_vm2, %v359_v47 }
 0x2fe   :  { %v456_v49 = vpop.f32.mrf.mxu1 }
 0x2ff   :  { %v457_v51 = vadd.f32 %v456_v49, %v385_v48 }
 0x300   :  { %v599_v52 = vpop.f32.mrf.mxu1 }
 0x301   :  { %v460_v53 = vsub.f32 %v457_v51, %v244_v50 }
 0x303   :  { %v461_v54 = vmul.f32 %v460_v53, %v460_v53 }
 0x305   :  { %v463_v55 = vsel %vm462_vm3, %v461_v54, 0.0 }
 0x306   :  { %464 = vadd.xlane.f32.xlu0 %v463_v55 }
 0x38f   :  { %v465_v56 = vpop.xlane.xlu0 %464 }
 0x390   :  { %v466_v57 = vrot.slane %v465_v56, 4 }
 0x392   :  { %v467_v58 = vadd.f32 %v466_v57, %v465_v56 }
 0x394   :  { %v468_v59 = vrot.slane %v467_v58, 2 }
 0x396   :  { %v469_v60 = vadd.f32 %v468_v59, %v467_v58 }
 0x398   :  { %v470_v61 = vrot.slane %v469_v60, 1 }
 0x39a   :  { %v471_v62 = vadd.f32 %v470_v61, %v469_v60 }
 0x39c   :  { %600 = vpush %v471_v62 }
 0x3cd   :  { %s601_s10 = spop %600 }
 0x3ce   :  { %s475_s11 = smul.f32 0.0078125, %s601_s10 }
 0x3d0   :  { %477 = sst [smem:[#allocation10]] %s475_s11 }
 0x3d1   :  { %485 = dma.smem_to_hbm %s721_s12, 16, %s835_s4, [#allocation4]  }
 0x3d2   :  { %708 = dma.done.wait [#allocation4], 16  }
 0x3d3   :  { %709 = vsyncadd [#allocation4], 4294967280 }
 0x3d4   :  { %489 = sfence }
 0x3d5   :  { %490 = vsyncpa [#allocation3], 1 }
 0x3d6   :  { %491 = vsyncpa [#allocation6], 1 }
 0x3d7   :  { %492 = vsyncpa [#allocation9], 1 }
 0x3d8   :  { %493 = vsyncpa [#allocation4], 1 }

</bundles_post_ra>
